<compile_context>
chip_gen: v7x
topology: tpu7x:2x2x1
jax: 0.10.0
libtpu: 0.0.40
codegen_flags: <defaults>
</compile_context>

<pallas_src>
import jax
import jax.numpy as jnp
from jax import lax
from jax.experimental import pallas as pl
from jax.experimental.pallas import tpu as pltpu


def _round_up(x, m):
    return ((x + m - 1) // m) * m


def linear_add_relu_kernel(x_ref, w_ref, b_ref, other_ref, o_ref):
    # x_ref:     (TB, 16)   (f32 or bf16)
    # w_ref:     (32, 16)   original (out, in) layout, NOT pre-transposed
    # b_ref:     (1, 32)    f32
    # other_ref: (TB, 32)   (f32 or bf16)
    # o_ref:     (TB, 32)
    x = x_ref[...]
    w = w_ref[...]
    # Contract last dim of x with last dim of w: (TB,16) x (32,16) -> (TB,32),
    # accumulated in f32 on the MXU regardless of input dtype.
    acc = lax.dot_general(
        x, w,
        dimension_numbers=(((1,), (1,)), ((), ())),
        preferred_element_type=jnp.float32,
    )
    acc = acc + b_ref[...] + other_ref[...].astype(jnp.float32)
    o_ref[...] = jnp.maximum(acc, 0.0).astype(o_ref.dtype)


def _make_tiled_spec(shape, index_map, buffer_count):
    """BlockSpec with optional deeper multi-buffering (graceful fallback)."""
    if buffer_count is not None and buffer_count > 2 and hasattr(pl, "Buffered"):
        try:
            return pl.BlockSpec(shape, index_map,
                                pipeline_mode=pl.Buffered(buffer_count))
        except TypeError:
            pass
    return pl.BlockSpec(shape, index_map)


def linear_add_relu_pallas(x2, weight, bias, other, *,
                           max_tile_rows=2048,
                           compute_dtype=None,
                           out_dtype=None,
                           input_buffer_count=3):
    """x2: (B, in), weight: (out, in), bias: (out,), other: (B, out)."""
    B, in_f = x2.shape
    out_f = weight.shape[0]
    if out_dtype is None:
        out_dtype = x2.dtype

    # Optional bf16 inputs: halves input HBM traffic (kernel is mem-bound);
    # accumulation stays f32 inside the kernel.
    if compute_dtype is not None:
        x2 = x2.astype(compute_dtype)
        weight = weight.astype(compute_dtype)
        other = other.astype(compute_dtype)
    b2 = bias.astype(jnp.float32).reshape(1, out_f)  # 2D for clean broadcast

    # Batch tile: full batch when small (block == full dims is always legal);
    # otherwise a large tile (multiple of 8), but keep >= ~4 grid steps so the
    # "parallel" axis gives both TensorCores work on v7x.
    if B <= max_tile_rows:
        tb = B
    else:
        tb = min(max_tile_rows, max(8, _round_up(pl.cdiv(B, 4), 8)))
    num_tiles = pl.cdiv(B, tb)
    grid = (num_tiles,)

    # Deep input prefetch only pays off with a long-enough grid.
    in_bufs = input_buffer_count if num_tiles >= 3 else None
    n_in_buf = input_buffer_count if num_tiles >= 3 else 2

    # Explicit VMEM budget (128-lane / 8-sublane padding, multi-buffered) so
    # large tiles don't hit the per-generation default scoped-VMEM limits.
    def _buf_bytes(rows, cols, dt):
        return _round_up(rows, 8) * _round_up(cols, 128) * jnp.dtype(dt).itemsize

    est = (n_in_buf * _buf_bytes(tb, in_f, x2.dtype)          # x tiles
           + n_in_buf * _buf_bytes(tb, out_f, other.dtype)    # other tiles
           + 2 * _buf_bytes(tb, out_f, out_dtype)             # out tiles
           + 2 * _buf_bytes(out_f, in_f, weight.dtype)        # resident weight
           + 2 * _buf_bytes(1, out_f, jnp.float32))           # resident bias
    vmem_limit = int(min(max(2 * est, 32 << 20), 64 << 20))   # 32-64 MiB window

    in_specs = [
        _make_tiled_spec((tb, in_f), lambda i: (i, 0), in_bufs),     # x tile
        pl.BlockSpec((out_f, in_f), lambda i: (0, 0)),               # weight
        pl.BlockSpec((1, out_f), lambda i: (0, 0)),                  # bias
        _make_tiled_spec((tb, out_f), lambda i: (i, 0), in_bufs),    # other tile
    ]

    return pl.pallas_call(
        linear_add_relu_kernel,
        out_shape=jax.ShapeDtypeStruct((B, out_f), out_dtype),
        grid=grid,
        in_specs=in_specs,
        out_specs=pl.BlockSpec((tb, out_f), lambda i: (i, 0)),
        compiler_params=pltpu.CompilerParams(
            dimension_semantics=("parallel",),
            vmem_limit_bytes=vmem_limit,
        ),
    )(x2, weight, b2, other)


def linear_add_relu(x2, weight, bias, other, *,
                    small_batch_threshold=1024, force_pallas=False, **kwargs):
    """Dispatcher: tiny batches are pure launch overhead for a pallas_call, so
    let XLA fuse matmul+add+relu; large batches take the Pallas kernel."""
    B = x2.shape[0]
    if not force_pallas and B < small_batch_threshold:
        return jnp.maximum(x2 @ weight.T + bias + other, 0.0).astype(x2.dtype)
    return linear_add_relu_pallas(x2, weight, bias, other, **kwargs)


if __name__ == "__main__":
    key = jax.random.PRNGKey(0)
    k_x, k_other, k_w, k_b = jax.random.split(key, 4)

    B, IN_F, OUT_F = 2, 16, 32

    x2 = jax.random.normal(k_x, (B, IN_F), dtype=jnp.float32)
    other = jax.random.uniform(k_other, (B, OUT_F), dtype=jnp.float32)

    # Deterministic parameter init (mimics nn.Linear uniform(-1/sqrt(in), 1/sqrt(in)))
    bound = 1.0 / (IN_F ** 0.5)
    weight = jax.random.uniform(k_w, (OUT_F, IN_F), dtype=jnp.float32,
                                minval=-bound, maxval=bound)
    bias = jax.random.uniform(k_b, (OUT_F,), dtype=jnp.float32,
                              minval=-bound, maxval=bound)

    # 1) Module-sized path (B=2): force the Pallas kernel and check exactly.
    out = linear_add_relu(x2, weight, bias, other, force_pallas=True)
    out = jax.block_until_ready(out)
    ref = jnp.maximum(x2 @ weight.T + bias + other, 0.0)
    assert out.shape == (B, OUT_F)
    assert jnp.allclose(out, ref, atol=1e-5, rtol=1e-5)

    # 2) Multi-tile pipelined path (f32): grid > 1, deep input buffering engaged.
    B2 = 1024
    kx2, ko2 = jax.random.split(jax.random.PRNGKey(1), 2)
    x_big = jax.random.normal(kx2, (B2, IN_F), dtype=jnp.float32)
    other_big = jax.random.uniform(ko2, (B2, OUT_F), dtype=jnp.float32)
    out_big = linear_add_relu_pallas(x_big, weight, bias, other_big,
                                     max_tile_rows=256)
    out_big = jax.block_until_ready(out_big)
    ref_big = jnp.maximum(x_big @ weight.T + bias + other_big, 0.0)
    assert jnp.allclose(out_big, ref_big, atol=1e-5, rtol=1e-5)

    # 3) bf16-input path (halves HBM traffic for the mem-bound large-B regime).
    out_bf16 = linear_add_relu_pallas(x_big, weight, bias, other_big,
                                      max_tile_rows=256,
                                      compute_dtype=jnp.bfloat16,
                                      out_dtype=jnp.float32)
    out_bf16 = jax.block_until_ready(out_bf16)
    assert jnp.allclose(out_bf16, ref_big, atol=5e-2, rtol=5e-2)

    print("KERNEL_OK")
</pallas_src>

<mosaic_0001>
module attributes {stable_mosaic.version = 11 : i64} {
  func.func @linear_add_relu_kernel(%arg0: i32, %arg1: memref<2x16xf32, #tpu.memory_space<vmem>>, %arg2: memref<32x16xf32, #tpu.memory_space<vmem>>, %arg3: memref<1x32xf32, #tpu.memory_space<vmem>>, %arg4: memref<2x32xf32, #tpu.memory_space<vmem>>, %arg5: memref<2x32xf32, #tpu.memory_space<vmem>>) attributes {dimension_semantics = [#tpu.dimension_semantics<parallel>], iteration_bounds = array<i64: 1>, scalar_prefetch = 0 : i64, scratch_operands = 0 : i64, tpu.core_type = #tpu.core_type<tc>, window_params = [{transform_indices = @transform_0, window_bounds = array<i64: 2, 16>}, {pipeline_mode = #tpu.pipeline_mode<synchronous>, transform_indices = @transform_1, window_bounds = array<i64: 32, 16>}, {pipeline_mode = #tpu.pipeline_mode<synchronous>, transform_indices = @transform_2, window_bounds = array<i64: 1, 32>}, {transform_indices = @transform_3, window_bounds = array<i64: 2, 32>}, {transform_indices = @transform_4, window_bounds = array<i64: 2, 32>}]} {
    %c0 = arith.constant 0 : index
    %c0_0 = arith.constant 0 : index
    %0 = vector.load %arg1[%c0, %c0_0] : memref<2x16xf32, #tpu.memory_space<vmem>>, vector<2x16xf32>
    %c0_1 = arith.constant 0 : index
    %c0_2 = arith.constant 0 : index
    %1 = vector.load %arg2[%c0_1, %c0_2] : memref<32x16xf32, #tpu.memory_space<vmem>>, vector<32x16xf32>
    %cst = arith.constant dense<0.000000e+00> : vector<2x32xf32>
    %2 = tpu.matmul %0, %1, %cst {dimension_numbers = #tpu.dot_dimension_numbers<[1], [1], [0], [0], [0, 0, 1, 0], [], []>} : vector<2x16xf32>, vector<32x16xf32>, vector<2x32xf32> -> vector<2x32xf32>
    %c0_3 = arith.constant 0 : index
    %c0_4 = arith.constant 0 : index
    %3 = vector.load %arg3[%c0_3, %c0_4] : memref<1x32xf32, #tpu.memory_space<vmem>>, vector<1x32xf32>
    %4 = vector.broadcast %3 : vector<1x32xf32> to vector<2x32xf32>
    %5 = arith.addf %2, %4 : vector<2x32xf32>
    %c0_5 = arith.constant 0 : index
    %c0_6 = arith.constant 0 : index
    %6 = vector.load %arg4[%c0_5, %c0_6] : memref<2x32xf32, #tpu.memory_space<vmem>>, vector<2x32xf32>
    %7 = arith.addf %5, %6 : vector<2x32xf32>
    %cst_7 = arith.constant 0.000000e+00 : f32
    %8 = vector.broadcast %cst_7 : f32 to vector<2x32xf32>
    %9 = arith.maximumf %7, %8 : vector<2x32xf32>
    %c0_8 = arith.constant 0 : index
    %c0_9 = arith.constant 0 : index
    %10 = vector.load %arg5[%c0_8, %c0_9] : memref<2x32xf32, #tpu.memory_space<vmem>>, vector<2x32xf32>
    tpu.vector_store %arg5[%c0_8, %c0_9], %9 {strides = array<i32>} : memref<2x32xf32, #tpu.memory_space<vmem>>, vector<2x32xf32>,
    return
  }
  func.func @transform_0(%arg0: i32) -> (i32, i32) {
    %c0_i32 = arith.constant 0 : i32
    %c0_i32_0 = arith.constant 0 : i32
    return %arg0, %c0_i32 : i32, i32
  }
  func.func @transform_1(%arg0: i32) -> (i32, i32) {
    %c0_i32 = arith.constant 0 : i32
    %c0_i32_0 = arith.constant 0 : i32
    %c0_i32_1 = arith.constant 0 : i32
    return %c0_i32, %c0_i32_0 : i32, i32
  }
  func.func @transform_2(%arg0: i32) -> (i32, i32) {
    %c0_i32 = arith.constant 0 : i32
    %c0_i32_0 = arith.constant 0 : i32
    %c0_i32_1 = arith.constant 0 : i32
    return %c0_i32, %c0_i32_0 : i32, i32
  }
  func.func @transform_3(%arg0: i32) -> (i32, i32) {
    %c0_i32 = arith.constant 0 : i32
    %c0_i32_0 = arith.constant 0 : i32
    return %arg0, %c0_i32 : i32, i32
  }
  func.func @transform_4(%arg0: i32) -> (i32, i32) {
    %c0_i32 = arith.constant 0 : i32
    %c0_i32_0 = arith.constant 0 : i32
    return %arg0, %c0_i32 : i32, i32
  }
}

</mosaic_0001>

<bundles_post_ra>
// kernel: tpu_custom_call.1
= control target key start
LH: loop header
LB: loop body
LE: loop exit
PB: predicated region body
PF: predicated region fallthrough
CT: control target
= control target key end

     0   :  { %vm30_vm0 = vcmask 130048   ;;  %v193_v2 = vmov 0.0|0.0   ;;  %vm194_vm2 = vmmov 0   ;;  %v195_v4 = vmov 0.0   ;;  %s258_s0 = inlined_call_operand.vmem [shape: f32[2,16], index: 0, kind: input, shape index: {}]   ;;  %s259_s1 = inlined_call_operand.vmem [shape: f32[32,16], index: 1, kind: input, shape index: {}]   ;;  %s260_s2 = inlined_call_operand.vmem [shape: f32[1,32], index: 2, kind: input, shape index: {}]   ;;  %s261_s3 = inlined_call_operand.vmem [shape: f32[2,32], index: 3, kind: input, shape index: {}]   ;;  %s262_s4 = inlined_call_operand.hbm [shape: f32[2,32], index: 4, kind: output, shape index: {}]  }
   0x1   :  { %v19_v0 = vld [vmem:[%s259_s1] sm:$0xff]  ;;  %v20_v1 = vld [vmem:[%s259_s1 + $0x8] sm:$0xff]  ;;  %157 = vmatprep.subr.bf16.mxu0 %v193_v2  ;;  %vm159_vm1 = vmpackc.low %vm30_vm0, %vm30_vm0  ;;  %154 = vmatprep.mubr.msk.f32.mxu0 %vm194_vm2, %v195_v4 }
   0x2   :  { %v158_v3 = vpack.c.bf16 %v20_v1, %v19_v0 }
   0x3   :  { %9 = vsyncpa [#allocation3], 0  ;;  %v21_v5 = vld [vmem:[%s259_s1 + $0x10] sm:$0xff]  ;;  %v22_v6 = vld [vmem:[%s259_s1 + $0x18] sm:$0xff]  ;;  %s196_s1 = smov [#allocation2]   ;;  %vm119_vm3 = vcmask 254976  }
   0x4   :  { %160 = vmatpush3.bf16.xpose.msk.msra.mxu0 %vm159_vm1, %v158_v3  ;;  %v162_v7 = vpack.c.bf16 %v22_v6, %v21_v5  ;;  %v18_v8 = vld [vmem:[%s258_s0] sm:$0x3]  ;;  %s127_s29 = sshll.u32 %s196_s1, 4  ;;  %s128_s29 = int_to_ptr.vmem [resolvable:$true] %s127_s29 }
   0x5   :  { %161 = vmatprep.subr.bf16.mxu0 %v193_v2  ;;  %v135_v9 = vld [vmem:[%s260_s2] ss:$0 sm:$0xff]  ;;  %s169_s0 = scalar_lea.vmem %s128_s29, 32  ;;  %p174_p1 = scmp.lt.s32.totalorder %s128_s29, %s128_s29 }
   0x6   :  { %v116_v11 = vld [vmem:[%s261_s3] sm:$0x3]  ;;  %p170_p0 = scmp.ne.s32.totalorder %s128_s29, %s169_s0  ;;  %p175_p2 = scmp.lt.s32.totalorder %s169_s0, %s169_s0 }
   0x8   :  { %p176_p3 = por %p175_p2, %p174_p1 }
   0xa   :  { %p177_p4 = pnand %p176_p3, %p170_p0 }
   0xc   :  { %164 = vmatpush3.bf16.xpose.msk.msra.mxu0 %vm159_vm1, %v162_v7 }
  0x13   :  { %155 = vmatmul.mubr.msk.f32.vlgmr.msra.gmra.mrb[0].mxu0 %vm30_vm0, %v18_v8 }
  0xe6   :  { %v112_v10 = vpop.f32.mrb[0].mxu0 }
  0xe7   :  { %v113_v12 = vadd.f32 %v135_v9, %v112_v10  ;;  %v156_v13 = vpop.f32.mrb[1].mxu0 }
  0xe9   :  { %v117_v14 = vadd.f32 %v116_v11, %v113_v12 }
  0xeb   :  { %v118_v15 = vmax.f32 %v117_v14, 0.0 }
  0xed   :  { %120 = vst.msk [vmem:[#allocation2] sm:$0x3] %vm119_vm3, %v118_v15 }
  0xee   :  { %180 = shalt.err (!%p177_p4)
}
  0xef   :  { %s181_s3 = scalar_lea.hbm %s262_s4, 32 }
  0xf0   :  { %p182_p5 = scmp.ne.s32.totalorder %s262_s4, %s181_s3  ;;  %p185_p6 = scmp.lt.u32.totalorder %s181_s3, %s262_s4 }
  0xf2   :  { %p187_p7 = pnand %p185_p6, %p182_p5 }
  0xf4   :  { %190 = shalt.err (!%p187_p7)
}
  0xf5   :  { %130 = dma.vmem_to_hbm [thread:$0]  %s128_s29, 32, %s262_s4, [#allocation3]  }
  0xf6   :  { %191 = dma.done.wait [#allocation3], 32  }
  0xf7   :  { %192 = vsyncadd [#allocation3], 4294967264 }
  0xf8   :  { %134 = vsyncpa [#allocation3], 1 }

</bundles_post_ra>
